<compile_context>
chip_gen: v6e
topology: v6e:2x2x1
jax: 0.10.0
libtpu: 0.0.40
codegen_flags: <defaults>
</compile_context>

<pallas_src>
import jax
import jax.numpy as jnp
from jax.experimental import pallas as pl
from jax.experimental.pallas import tpu as pltpu


def _round_up(x, m):
    return (x + m - 1) // m * m


def _sublane(dtype):
    # Sublane tile height for a dtype (f32 -> 8, bf16 -> 16).
    return 8 * max(1, 4 // jnp.dtype(dtype).itemsize)


def _vmem_capacity_bytes():
    try:
        return int(pltpu.get_tpu_info().vmem_capacity_bytes)
    except Exception:
        return 64 << 20  # conservative: v7x per-TensorCore physical VMEM


# --------------------------------------------------------------------------- #
# Kernel
# --------------------------------------------------------------------------- #
def _attention_kernel(q_ref, v_ref, lens_ref,
                      wd_ref, bd_ref, weT_ref, be_ref, wv_ref, bv_ref,
                      out_ref):
    q = q_ref[...]           # (bt, D)     compute dtype
    vT = v_ref[...]          # (bt, E, T)  compute dtype, T on lanes
    lens = lens_ref[...]     # (bt, 1)     int32

    # dec_proj: sp = q @ Wd + bd                          (bt, Ap), f32 accum.
    sp = jnp.dot(q, wd_ref[...], preferred_element_type=jnp.float32) + bd_ref[...]

    # Fused enc_proj score path:
    #   e[b,t] = v[b,:,t] . u[b] + be . sp[b],   u = sp @ We^T   (bt, E) f32
    u = jnp.dot(sp.astype(weT_ref.dtype), weT_ref[...],
                preferred_element_type=jnp.float32)               # (bt, E)
    e_bias = jnp.sum(sp * be_ref[...], axis=-1, keepdims=True)    # (bt, 1)
    # Explicit VPU multiply + cross-sublane reduce (T stays on lanes); the f32
    # broadcast of u promotes bf16 v to f32 in-register (mixed precision).
    e = jnp.sum(vT * u[:, :, None], axis=1) + e_bias              # (bt, T) f32

    # Mask positions t > len, then masked softmax over T (lane axis), all f32.
    t_idx = jax.lax.broadcasted_iota(jnp.int32, e.shape, 1)
    e = jnp.where(t_idx > lens, jnp.float32(-1e10), e)
    m = jnp.max(e, axis=-1, keepdims=True)
    p = jnp.exp(e - m)
    w = p / jnp.sum(p, axis=-1, keepdims=True)                    # (bt, T) f32

    # Fused value path: c = (sum_t w_t * v_t) @ Wv + bv  (softmax sums to 1).
    # w stays f32 in the context reduction (lane reduce).
    ctx = jnp.sum(vT * w[:, None, :], axis=2)                     # (bt, E) f32
    c = jnp.dot(ctx.astype(wv_ref.dtype), wv_ref[...],
                preferred_element_type=jnp.float32) + bv_ref[...]  # (bt, Ap)
    out_ref[...] = c.astype(out_ref.dtype)


# --------------------------------------------------------------------------- #
# One-time prep (hoisted out of the decode loop)
# --------------------------------------------------------------------------- #
def prepare_attention_params(params, *, compute_dtype=jnp.float32):
    """One-time weight prep: cast, pre-transpose We, zero-pad att_dim to 128x."""
    D, A = params["wd"].shape
    Ap = _round_up(A, 128)
    pa = Ap - A

    def pad_cols(x):                       # (r, A) -> (r, Ap), zero fill
        return jnp.pad(x, ((0, 0), (0, pa)))

    return dict(
        att_dim=A,
        compute_dtype=jnp.dtype(compute_dtype),
        wd=pad_cols(params["wd"]).astype(compute_dtype),                       # (D, Ap)
        bd=pad_cols(params["bd"]).astype(jnp.float32),                         # (1, Ap)
        weT=jnp.pad(params["we"].T, ((0, pa), (0, 0))).astype(compute_dtype),  # (Ap, E)
        be=pad_cols(params["be"]).astype(jnp.float32),                         # (1, Ap)
        wv=pad_cols(params["wv"]).astype(compute_dtype),                       # (E, Ap)
        bv=pad_cols(params["bv"]).astype(jnp.float32),                         # (1, Ap)
    )


def prepare_encoder_states(v, seq_lens, *, compute_dtype=jnp.float32):
    """One-time per-utterance prep (v is constant across decoder steps):
    cast, transpose to (B, E, T) so T rides on lanes, pad batch by < 8 rows."""
    B, T, E = v.shape
    B8 = _round_up(B, 8)
    vT = jnp.swapaxes(v, 1, 2).astype(compute_dtype)              # (B, E, T)
    lens = jnp.asarray(seq_lens, dtype=jnp.int32).reshape(B, 1)
    if B8 != B:
        vT = jnp.pad(vT, ((0, B8 - B), (0, 0), (0, 0)))
        lens = jnp.pad(lens, ((0, B8 - B), (0, 0)))
    return vT, lens


def _choose_block_b(B8, E, T, compute_dtype, *, tile_budget_bytes=4 << 20):
    """Largest multiple-of-8 divisor of B8 whose padded-layout v tile fits the
    per-buffer budget, with grid >= 2 whenever B8 >= 16 (v7x megacore)."""
    itemsize = jnp.dtype(compute_dtype).itemsize
    row_bytes = _round_up(E, _sublane(compute_dtype)) * _round_up(T, 128) * itemsize
    cap = max(8, (tile_budget_bytes // max(row_bytes, 1)) // 8 * 8)
    k = B8 // 8
    bt = 8
    for d in range(1, k + 1):
        if k % d:
            continue
        cand = 8 * d
        grid = k // d
        if cand <= cap and (grid >= 2 or k == 1):
            bt = max(bt, cand)
    return bt


# --------------------------------------------------------------------------- #
# Per-decoder-step forward
# --------------------------------------------------------------------------- #
def attention_forward(q, enc_vT, enc_lens, prepared, *,
                      tile_budget_bytes=4 << 20, v_buffer_count=2):
    """q: (B, D); enc_vT/enc_lens from prepare_encoder_states; prepared from
    prepare_attention_params.  Returns the context (B, att_dim) in f32."""
    B, D = q.shape
    B8, E, T = enc_vT.shape
    A = prepared["att_dim"]
    Ap = prepared["wd"].shape[1]
    cdt = prepared["compute_dtype"]
    itemsize = jnp.dtype(cdt).itemsize
    sub = _sublane(cdt)

    bt = _choose_block_b(B8, E, T, cdt, tile_budget_bytes=tile_budget_bytes)
    grid = B8 // bt

    # Per-call prep touches only q (small): cast + (< 8 row) batch pad.
    q_p = q.astype(cdt)
    if B8 != B:
        q_p = jnp.pad(q_p, ((0, B8 - B), (0, 0)))

    # VMEM estimate with layout padding (lanes->128, sublanes->8/16) plus the f32
    # intermediates of the score/context multiplies and single-buffered weights.
    Tp = _round_up(T, 128)
    Ep = _round_up(E, sub)
    v_tile = bt * Ep * Tp * itemsize
    q_tile = bt * _round_up(D, 128) * itemsize
    lens_tile = bt * 128 * 4
    out_tile = bt * Ap * 4
    f32_tmp = bt * _round_up(E, 8) * Tp * 4
    weights = (_round_up(D, sub) * Ap + Ap * _round_up(E, 128)
               + _round_up(E, sub) * Ap) * itemsize + 3 * Ap * 4
    vmem_est = (v_buffer_count * v_tile + 2 * (q_tile + lens_tile + out_tile)
                + 2 * f32_tmp + weights + bt * (4 * Tp + 2 * Ap + 128) * 4
                + (1 << 20))
    vmem_limit = int(min(_vmem_capacity_bytes() - (8 << 20), 56 << 20,
                         max(24 << 20, 2 * vmem_est)))

    flops_per_row = 2 * (D * Ap + Ap * E + Ap + 2 * T * E + E * Ap) + 6 * T
    bytes_accessed = (B8 * (D + T * E) * itemsize + weights + B8 * 4
                      + B8 * Ap * 4)

    wbuf = pl.Buffered(1)   # constant index_map -> single-buffer the weights
    vbuf = pl.Buffered(v_buffer_count)

    # TODO(synk): for very long T (esp. against v7x's 64 MiB VMEM) add a T-tiled
    # inner grid with an online softmax instead of shrinking bt toward 8.
    out = pl.pallas_call(
        _attention_kernel,
        out_shape=jax.ShapeDtypeStruct((B8, Ap), jnp.float32),
        grid_spec=pltpu.PrefetchScalarGridSpec(
            num_scalar_prefetch=0,
            grid=(grid,),
            in_specs=[
                pl.BlockSpec((bt, D), lambda b: (b, 0)),                          # q
                pl.BlockSpec((bt, E, T), lambda b: (b, 0, 0), pipeline_mode=vbuf),  # v^T
                pl.BlockSpec((bt, 1), lambda b: (b, 0)),                          # lens
                pl.BlockSpec((D, Ap), lambda b: (0, 0), pipeline_mode=wbuf),      # Wd
                pl.BlockSpec((1, Ap), lambda b: (0, 0), pipeline_mode=wbuf),      # bd
                pl.BlockSpec((Ap, E), lambda b: (0, 0), pipeline_mode=wbuf),      # We^T
                pl.BlockSpec((1, Ap), lambda b: (0, 0), pipeline_mode=wbuf),      # be
                pl.BlockSpec((E, Ap), lambda b: (0, 0), pipeline_mode=wbuf),      # Wv
                pl.BlockSpec((1, Ap), lambda b: (0, 0), pipeline_mode=wbuf),      # bv
            ],
            out_specs=pl.BlockSpec((bt, Ap), lambda b: (b, 0)),   # lane-dense tile
        ),
        compiler_params=pltpu.CompilerParams(
            dimension_semantics=("parallel",),
            vmem_limit_bytes=vmem_limit,
        ),
        cost_estimate=pl.CostEstimate(
            flops=int(B8 * flops_per_row),
            transcendentals=int(B8 * T),
            bytes_accessed=int(bytes_accessed),
        ),
    )(q_p, enc_vT, enc_lens,
      prepared["wd"], prepared["bd"], prepared["weT"], prepared["be"],
      prepared["wv"], prepared["bv"])
    return out[:B, :A]


def attention_apply(q, v, seq_lens, params, *, compute_dtype=jnp.float32):
    """Convenience one-shot wrapper (in a real LAS decode loop, hoist the prep)."""
    prepared = prepare_attention_params(params, compute_dtype=compute_dtype)
    enc_vT, enc_lens = prepare_encoder_states(v, seq_lens, compute_dtype=compute_dtype)
    return attention_forward(q, enc_vT, enc_lens, prepared)


# --------------------------------------------------------------------------- #
# Pure-JAX reference + init
# --------------------------------------------------------------------------- #
def attention_reference(q, v, seq_lens, params):
    """Pure-JAX mirror of the PyTorch forward, for validation."""
    B, D = q.shape
    _, T, E = v.shape
    lens = jnp.asarray(seq_lens, dtype=jnp.int32)
    sp = q @ params["wd"] + params["bd"]              # (B, A)
    lp = v @ params["we"] + params["be"]              # (B, T, A)
    val = v @ params["wv"] + params["bv"]             # (B, T, A)
    e = jnp.einsum("bta,ba->bt", lp, sp)              # (B, T)
    mask = jnp.arange(T)[None, :] > lens[:, None]     # S > L
    e = jnp.where(mask, -1e10, e)
    w = jax.nn.softmax(e, axis=1)
    c = jnp.einsum("bt,bta->ba", w, val)
    return c


def init_params(key, encode_dim, decode_dim, att_dim):
    """Deterministic nn.Linear-style init; weights stored as (in, out)."""
    ks = jax.random.split(key, 6)

    def linear(kw, kb, in_dim, out_dim):
        bound = 1.0 / (in_dim ** 0.5)
        w = jax.random.uniform(kw, (in_dim, out_dim), jnp.float32, -bound, bound)
        b = jax.random.uniform(kb, (1, out_dim), jnp.float32, -bound, bound)
        return w, b

    wd, bd = linear(ks[0], ks[1], decode_dim, att_dim)   # dec_proj
    we, be = linear(ks[2], ks[3], encode_dim, att_dim)   # enc_proj
    wv, bv = linear(ks[4], ks[5], encode_dim, att_dim)   # value_proj
    return {"wd": wd, "bd": bd, "we": we, "be": be, "wv": wv, "bv": bv}


if __name__ == "__main__":
    key = jax.random.PRNGKey(0)
    kq, kv, kp, k2 = jax.random.split(key, 4)

    # ---- Case 1: tiny shapes; exact f32 semantics + bf16 MXU-operand path ----
    B, T, ENC, DEC, ATT = 2, 16, 32, 32, 32
    q = jax.random.normal(kq, (B, DEC), jnp.float32)
    v = jax.random.normal(kv, (B, T, ENC), jnp.float32)
    seq_lens = [5, 12]
    params = init_params(kp, ENC, DEC, ATT)
    ref = attention_reference(q, v, seq_lens, params)

    prepared = prepare_attention_params(params)              # hoisted: once per model
    enc_vT, enc_lens = prepare_encoder_states(v, seq_lens)   # hoisted: once per utterance
    out = jax.block_until_ready(attention_forward(q, enc_vT, enc_lens, prepared))
    assert out.shape == (B, ATT)
    assert jnp.allclose(out, ref, atol=1e-4, rtol=1e-4), (
        f"f32 max abs err {jnp.max(jnp.abs(out - ref))}")

    out_bf16 = jax.block_until_ready(
        attention_apply(q, v, seq_lens, params, compute_dtype=jnp.bfloat16))
    assert jnp.allclose(out_bf16, ref, atol=5e-2, rtol=5e-2), (
        f"bf16 max abs err {jnp.max(jnp.abs(out_bf16 - ref))}")

    # ---- Case 2: multi-step grid (grid >= 2), padded att_dim (48 -> 128) ----
    B2, T2, ENC2, DEC2, ATT2 = 16, 64, 32, 32, 48
    kq2, kv2, kp2 = jax.random.split(k2, 3)
    q2 = jax.random.normal(kq2, (B2, DEC2), jnp.float32)
    v2 = jax.random.normal(kv2, (B2, T2, ENC2), jnp.float32)
    seq_lens2 = list(range(3, 3 + B2))
    params2 = init_params(kp2, ENC2, DEC2, ATT2)
    ref2 = attention_reference(q2, v2, seq_lens2, params2)

    prep2 = prepare_attention_params(params2)
    enc2, lens2 = prepare_encoder_states(v2, seq_lens2)
    out2 = jax.block_until_ready(attention_forward(q2, enc2, lens2, prep2))
    assert out2.shape == (B2, ATT2)
    assert jnp.allclose(out2, ref2, atol=1e-4, rtol=1e-4), (
        f"f32 max abs err {jnp.max(jnp.abs(out2 - ref2))}")

    out2_bf16 = jax.block_until_ready(
        attention_apply(q2, v2, seq_lens2, params2, compute_dtype=jnp.bfloat16))
    assert jnp.allclose(out2_bf16, ref2, atol=1e-1, rtol=1e-1), (
        f"bf16 max abs err {jnp.max(jnp.abs(out2_bf16 - ref2))}")

    print("KERNEL_OK")
</pallas_src>

<mosaic_0001>
module attributes {stable_mosaic.version = 11 : i64} {
  func.func @_attention_kernel(%arg0: i32, %arg1: memref<8x32xf32, #tpu.memory_space<vmem>>, %arg2: memref<8x32x16xf32, #tpu.memory_space<vmem>>, %arg3: memref<8x1xi32, #tpu.memory_space<vmem>>, %arg4: memref<32x128xf32, #tpu.memory_space<vmem>>, %arg5: memref<1x128xf32, #tpu.memory_space<vmem>>, %arg6: memref<128x32xf32, #tpu.memory_space<vmem>>, %arg7: memref<1x128xf32, #tpu.memory_space<vmem>>, %arg8: memref<32x128xf32, #tpu.memory_space<vmem>>, %arg9: memref<1x128xf32, #tpu.memory_space<vmem>>, %arg10: memref<8x128xf32, #tpu.memory_space<vmem>>) attributes {dimension_semantics = [#tpu.dimension_semantics<parallel>], iteration_bounds = array<i64: 1>, scalar_prefetch = 0 : i64, scratch_operands = 0 : i64, tpu.core_type = #tpu.core_type<tc>, window_params = [{transform_indices = @transform_0, window_bounds = array<i64: 8, 32>}, {pipeline_mode = #tpu.pipeline_mode<double_buffered>, transform_indices = @transform_1, window_bounds = array<i64: 8, 32, 16>}, {transform_indices = @transform_2, window_bounds = array<i64: 8, 1>}, {pipeline_mode = #tpu.pipeline_mode<synchronous>, transform_indices = @transform_3, window_bounds = array<i64: 32, 128>}, {pipeline_mode = #tpu.pipeline_mode<synchronous>, transform_indices = @transform_4, window_bounds = array<i64: 1, 128>}, {pipeline_mode = #tpu.pipeline_mode<synchronous>, transform_indices = @transform_5, window_bounds = array<i64: 128, 32>}, {pipeline_mode = #tpu.pipeline_mode<synchronous>, transform_indices = @transform_6, window_bounds = array<i64: 1, 128>}, {pipeline_mode = #tpu.pipeline_mode<synchronous>, transform_indices = @transform_7, window_bounds = array<i64: 32, 128>}, {pipeline_mode = #tpu.pipeline_mode<synchronous>, transform_indices = @transform_8, window_bounds = array<i64: 1, 128>}, {transform_indices = @transform_9, window_bounds = array<i64: 8, 128>}]} {
    %c0 = arith.constant 0 : index
    %c0_0 = arith.constant 0 : index
    %0 = vector.load %arg1[%c0, %c0_0] : memref<8x32xf32, #tpu.memory_space<vmem>>, vector<8x32xf32>
    %c0_1 = arith.constant 0 : index
    %c0_2 = arith.constant 0 : index
    %c0_3 = arith.constant 0 : index
    %1 = vector.load %arg2[%c0_1, %c0_2, %c0_3] : memref<8x32x16xf32, #tpu.memory_space<vmem>>, vector<8x32x16xf32>
    %c0_4 = arith.constant 0 : index
    %c0_5 = arith.constant 0 : index
    %2 = vector.load %arg3[%c0_4, %c0_5] : memref<8x1xi32, #tpu.memory_space<vmem>>, vector<8x1xi32>
    %c0_6 = arith.constant 0 : index
    %c0_7 = arith.constant 0 : index
    %3 = vector.load %arg4[%c0_6, %c0_7] : memref<32x128xf32, #tpu.memory_space<vmem>>, vector<32x128xf32>
    %cst = arith.constant dense<0.000000e+00> : vector<8x128xf32>
    %4 = tpu.matmul %0, %3, %cst {dimension_numbers = #tpu.dot_dimension_numbers<[1], [0], [0], [1], [0, 0, 1, 1], [], []>} : vector<8x32xf32>, vector<32x128xf32>, vector<8x128xf32> -> vector<8x128xf32>
    %c0_8 = arith.constant 0 : index
    %c0_9 = arith.constant 0 : index
    %5 = vector.load %arg5[%c0_8, %c0_9] : memref<1x128xf32, #tpu.memory_space<vmem>>, vector<1x128xf32>
    %6 = vector.broadcast %5 : vector<1x128xf32> to vector<8x128xf32>
    %7 = arith.addf %4, %6 : vector<8x128xf32>
    %c0_10 = arith.constant 0 : index
    %c0_11 = arith.constant 0 : index
    %8 = vector.load %arg6[%c0_10, %c0_11] : memref<128x32xf32, #tpu.memory_space<vmem>>, vector<128x32xf32>
    %cst_12 = arith.constant dense<0.000000e+00> : vector<8x32xf32>
    %9 = tpu.matmul %7, %8, %cst_12 {dimension_numbers = #tpu.dot_dimension_numbers<[1], [0], [0], [1], [0, 0, 1, 1], [], []>} : vector<8x128xf32>, vector<128x32xf32>, vector<8x32xf32> -> vector<8x32xf32>
    %c0_13 = arith.constant 0 : index
    %c0_14 = arith.constant 0 : index
    %10 = vector.load %arg7[%c0_13, %c0_14] : memref<1x128xf32, #tpu.memory_space<vmem>>, vector<1x128xf32>
    %11 = vector.broadcast %10 : vector<1x128xf32> to vector<8x128xf32>
    %12 = arith.mulf %7, %11 : vector<8x128xf32>
    %cst_15 = arith.constant dense<0.000000e+00> : vector<8xf32>
    %13 = vector.multi_reduction <add>, %12, %cst_15 [1] : vector<8x128xf32> to vector<8xf32>
    %14 = vector.shape_cast %13 : vector<8xf32> to vector<8x1xf32>
    %15 = vector.shape_cast %9 : vector<8x32xf32> to vector<8x32x1xf32>
    %16 = vector.broadcast %15 : vector<8x32x1xf32> to vector<8x32x16xf32>
    %17 = arith.mulf %1, %16 : vector<8x32x16xf32>
    %cst_16 = arith.constant dense<0.000000e+00> : vector<8x16xf32>
    %18 = vector.multi_reduction <add>, %17, %cst_16 [1] : vector<8x32x16xf32> to vector<8x16xf32>
    %19 = vector.broadcast %14 : vector<8x1xf32> to vector<8x16xf32>
    %20 = arith.addf %18, %19 : vector<8x16xf32>
    %21 = tpu.iota {dimensions = array<i32: 1>} : vector<8x16xi32>
    %22 = vector.broadcast %2 : vector<8x1xi32> to vector<8x16xi32>
    %23 = arith.cmpi sgt, %21, %22 : vector<8x16xi32>
    %cst_17 = arith.constant -1.000000e+10 : f32
    %24 = vector.broadcast %cst_17 : f32 to vector<8x16xf32>
    %25 = arith.select %23, %24, %20 : vector<8x16xi1>, vector<8x16xf32>
    %cst_18 = arith.constant dense<0xFF800000> : vector<8xf32>
    %26 = vector.multi_reduction <maximumf>, %25, %cst_18 [1] : vector<8x16xf32> to vector<8xf32>
    %27 = vector.shape_cast %26 : vector<8xf32> to vector<8x1xf32>
    %28 = vector.broadcast %27 : vector<8x1xf32> to vector<8x16xf32>
    %29 = arith.subf %25, %28 : vector<8x16xf32>
    %30 = math.exp %29 : vector<8x16xf32>
    %cst_19 = arith.constant dense<0.000000e+00> : vector<8xf32>
    %31 = vector.multi_reduction <add>, %30, %cst_19 [1] : vector<8x16xf32> to vector<8xf32>
    %32 = vector.shape_cast %31 : vector<8xf32> to vector<8x1xf32>
    %33 = vector.broadcast %32 : vector<8x1xf32> to vector<8x16xf32>
    %34 = arith.divf %30, %33 : vector<8x16xf32>
    %35 = vector.shape_cast %34 : vector<8x16xf32> to vector<8x1x16xf32>
    %36 = vector.broadcast %35 : vector<8x1x16xf32> to vector<8x32x16xf32>
    %37 = arith.mulf %1, %36 : vector<8x32x16xf32>
    %cst_20 = arith.constant dense<0.000000e+00> : vector<8x32xf32>
    %38 = vector.multi_reduction <add>, %37, %cst_20 [2] : vector<8x32x16xf32> to vector<8x32xf32>
    %c0_21 = arith.constant 0 : index
    %c0_22 = arith.constant 0 : index
    %39 = vector.load %arg8[%c0_21, %c0_22] : memref<32x128xf32, #tpu.memory_space<vmem>>, vector<32x128xf32>
    %cst_23 = arith.constant dense<0.000000e+00> : vector<8x128xf32>
    %40 = tpu.matmul %38, %39, %cst_23 {dimension_numbers = #tpu.dot_dimension_numbers<[1], [0], [0], [1], [0, 0, 1, 1], [], []>} : vector<8x32xf32>, vector<32x128xf32>, vector<8x128xf32> -> vector<8x128xf32>
    %c0_24 = arith.constant 0 : index
    %c0_25 = arith.constant 0 : index
    %41 = vector.load %arg9[%c0_24, %c0_25] : memref<1x128xf32, #tpu.memory_space<vmem>>, vector<1x128xf32>
    %42 = vector.broadcast %41 : vector<1x128xf32> to vector<8x128xf32>
    %43 = arith.addf %40, %42 : vector<8x128xf32>
    %c0_26 = arith.constant 0 : index
    %c0_27 = arith.constant 0 : index
    %44 = vector.load %arg10[%c0_26, %c0_27] : memref<8x128xf32, #tpu.memory_space<vmem>>, vector<8x128xf32>
    tpu.vector_store %arg10[%c0_26, %c0_27], %43 {strides = array<i32>} : memref<8x128xf32, #tpu.memory_space<vmem>>, vector<8x128xf32>,
    return
  }
  func.func @transform_0(%arg0: i32) -> (i32, i32) {
    %c0_i32 = arith.constant 0 : i32
    %c0_i32_0 = arith.constant 0 : i32
    return %arg0, %c0_i32 : i32, i32
  }
  func.func @transform_1(%arg0: i32) -> (i32, i32, i32) {
    %c0_i32 = arith.constant 0 : i32
    %c0_i32_0 = arith.constant 0 : i32
    %c0_i32_1 = arith.constant 0 : i32
    return %arg0, %c0_i32, %c0_i32_0 : i32, i32, i32
  }
  func.func @transform_2(%arg0: i32) -> (i32, i32) {
    %c0_i32 = arith.constant 0 : i32
    %c0_i32_0 = arith.constant 0 : i32
    return %arg0, %c0_i32 : i32, i32
  }
  func.func @transform_3(%arg0: i32) -> (i32, i32) {
    %c0_i32 = arith.constant 0 : i32
    %c0_i32_0 = arith.constant 0 : i32
    %c0_i32_1 = arith.constant 0 : i32
    return %c0_i32, %c0_i32_0 : i32, i32
  }
  func.func @transform_4(%arg0: i32) -> (i32, i32) {
    %c0_i32 = arith.constant 0 : i32
    %c0_i32_0 = arith.constant 0 : i32
    %c0_i32_1 = arith.constant 0 : i32
    return %c0_i32, %c0_i32_0 : i32, i32
  }
  func.func @transform_5(%arg0: i32) -> (i32, i32) {
    %c0_i32 = arith.constant 0 : i32
    %c0_i32_0 = arith.constant 0 : i32
    %c0_i32_1 = arith.constant 0 : i32
    return %c0_i32, %c0_i32_0 : i32, i32
  }
  func.func @transform_6(%arg0: i32) -> (i32, i32) {
    %c0_i32 = arith.constant 0 : i32
    %c0_i32_0 = arith.constant 0 : i32
    %c0_i32_1 = arith.constant 0 : i32
    return %c0_i32, %c0_i32_0 : i32, i32
  }
  func.func @transform_7(%arg0: i32) -> (i32, i32) {
    %c0_i32 = arith.constant 0 : i32
    %c0_i32_0 = arith.constant 0 : i32
    %c0_i32_1 = arith.constant 0 : i32
    return %c0_i32, %c0_i32_0 : i32, i32
  }
  func.func @transform_8(%arg0: i32) -> (i32, i32) {
    %c0_i32 = arith.constant 0 : i32
    %c0_i32_0 = arith.constant 0 : i32
    %c0_i32_1 = arith.constant 0 : i32
    return %c0_i32, %c0_i32_0 : i32, i32
  }
  func.func @transform_9(%arg0: i32) -> (i32, i32) {
    %c0_i32 = arith.constant 0 : i32
    %c0_i32_0 = arith.constant 0 : i32
    return %arg0, %c0_i32 : i32, i32
  }
}

</mosaic_0001>

<bundles_post_ra>
// kernel: tpu_custom_call.1
= control target key start
LH: loop header
LB: loop body
LE: loop exit
PB: predicated region body
PF: predicated region fallthrough
CT: control target
= control target key end

     0   :  { %v1891_v1 = vmov 0.0   ;;  %vm1245_vm0 = vmmov 0   ;;  %vm78_vm1 = vcmask 261120   ;;  %s1881_s0 = inlined_call_operand.vmem [shape: f32[8,32], index: 0, kind: input, shape index: {}]   ;;  %s1882_s1 = inlined_call_operand.vmem [shape: f32[8,32,16], index: 1, kind: input, shape index: {}]   ;;  %s1883_s2 = inlined_call_operand.vmem [shape: s32[8,1], index: 2, kind: input, shape index: {}]   ;;  %s1884_s3 = inlined_call_operand.vmem [shape: f32[32,128], index: 3, kind: input, shape index: {}]   ;;  %s1885_s4 = inlined_call_operand.vmem [shape: f32[1,128], index: 4, kind: input, shape index: {}]   ;;  %s1886_s5 = inlined_call_operand.vmem [shape: f32[128,32], index: 5, kind: input, shape index: {}]   ;;  %s1887_s6 = inlined_call_operand.vmem [shape: f32[1,128], index: 6, kind: input, shape index: {}]   ;;  %s1888_s7 = inlined_call_operand.vmem [shape: f32[32,128], index: 7, kind: input, shape index: {}]   ;;  %s1889_s8 = inlined_call_operand.vmem [shape: f32[1,128], index: 8, kind: input, shape index: {}]   ;;  %s1890_s9 = inlined_call_operand.hbm [shape: f32[8,128], index: 9, kind: output, shape index: {}]  }
   0x1   :  { %v70_v0 = vld [vmem:[%s1884_s3 + $0x18] sm:$0xff]  ;;  %1154 = vmatprep.subr.mxu0 %v1891_v1  ;;  %v69_v2 = vld [vmem:[%s1884_s3 + $0x10] sm:$0xff]  ;;  %1162 = vmatprep.mubr.msk.f32.mxu0 %vm1245_vm0, %v1891_v1  ;;  %v68_v5 = vld [vmem:[%s1884_s3 + $0x8] sm:$0xff] }
   0x2   :  { %v167_v3 = vld [vmem:[%s1886_s5 + $0x78] sm:$0xff]  ;;  %1155 = vmatpush3.msra.mxu0 %v70_v0  ;;  %1165 = vmatprep.subr.mxu1 %v1891_v1  ;;  %v166_v4 = vld [vmem:[%s1886_s5 + $0x70] sm:$0xff]  ;;  %v165_v6 = vld [vmem:[%s1886_s5 + $0x68] sm:$0xff] }
   0x3   :  { %1156 = vmatprep.subr.mxu0 %v1891_v1  ;;  %1166 = vmatpush3.msra.mxu1 %v167_v3  ;;  %v67_v7 = vld [vmem:[%s1884_s3] sm:$0xff] }
   0x4   :  { %1157 = vmatpush3.msra.mxu0 %v69_v2  ;;  %1167 = vmatprep.subr.mxu1 %v1891_v1  ;;  %v33_v8 = vld [vmem:[%s1881_s0] sm:$0xff] }
   0x5   :  { %1158 = vmatprep.subr.mxu0 %v1891_v1  ;;  %1168 = vmatpush3.msra.mxu1 %v166_v4  ;;  %v164_v9 = vld [vmem:[%s1886_s5 + $0x60] sm:$0xff] }
   0x6   :  { %1159 = vmatpush3.msra.mxu0 %v68_v5  ;;  %1169 = vmatprep.subr.mxu1 %v1891_v1 }
   0x7   :  { %14 = vsyncpa [#allocation3], 0  ;;  %1160 = vmatprep.subr.mxu0 %v1891_v1  ;;  %1170 = vmatpush3.msra.mxu1 %v165_v6  ;;  %v163_v10 = vld [vmem:[%s1886_s5 + $0x58] sm:$0xff]  ;;  %v162_v11 = vld [vmem:[%s1886_s5 + $0x50] sm:$0xff]  ;;  %v1246_v26 = vmov 0   ;;  %v1893_v27 = vlaneseq  ;;  %vm432_vm2 = vcmask 130048  }
   0x8   :  { %1161 = vmatpush3.msra.mxu0 %v67_v7  ;;  %1171 = vmatprep.subr.mxu1 %v1891_v1  ;;  %v161_v12 = vld [vmem:[%s1886_s5 + $0x48] sm:$0xff]  ;;  %v160_v13 = vld [vmem:[%s1886_s5 + $0x40] sm:$0xff]  ;;  %v159_v14 = vld [vmem:[%s1886_s5 + $0x38] sm:$0xff]  ;;  %vm576_vm3 = vcmask 1041409   ;;  %vm579_vm4 = vcmask 1042434   ;;  %vm582_vm5 = vcmask 1043459  }
   0x9   :  { %1163 = vmatmul.mubr.msk.f32.vlgmr.msra.gmra.mxu0 %vm78_vm1, %v33_v8  ;;  %1172 = vmatpush3.msra.mxu1 %v164_v9  ;;  %v158_v15 = vld [vmem:[%s1886_s5 + $0x30] sm:$0xff]  ;;  %v157_v16 = vld [vmem:[%s1886_s5 + $0x28] sm:$0xff]  ;;  %v156_v17 = vld [vmem:[%s1886_s5 + $0x20] sm:$0xff]  ;;  %v1394_v28 = vshrl.u32 %v1893_v27, 7  ;;  %vm585_vm6 = vcmask 1044484   ;;  %vm588_vm7 = vcmask 1045509  }
   0xa   :  { %1173 = vmatprep.subr.mxu1 %v1891_v1  ;;  %1197 = vmatprep.mubr.msk.f32.mxu1 %vm1245_vm0, %v1891_v1  ;;  %v155_v18 = vld [vmem:[%s1886_s5 + $0x18] sm:$0xff]  ;;  %v154_v19 = vld [vmem:[%s1886_s5 + $0x10] sm:$0xff]  ;;  %v153_v20 = vld [vmem:[%s1886_s5 + $0x8] sm:$0xff]  ;;  %vm591_vm8 = vcmask 1046534   ;;  %vm594_vm9 = vcmask 1047559   ;;  %vm879_vm11 = vcmask 130112  }
   0xb   :  { %1174 = vmatpush3.msra.mxu1 %v163_v10  ;;  %1200 = vmatprep.subr.mxu0 %v1891_v1  ;;  %v152_v21 = vld [vmem:[%s1886_s5] sm:$0xff]  ;;  %v288_v29 = vsub.s32 2, %v1394_v28  ;;  %v269_v30 = vsub.s32 1, %v1394_v28  ;;  %v1399_v35 = vsub.s32 0, %v1394_v28  ;;  %v307_v37 = vsub.s32 3, %v1394_v28  ;;  %s1248_s25 = smov [#allocation2]  }
   0xc   :  { %1175 = vmatprep.subr.mxu1 %v1891_v1  ;;  %1208 = vmatprep.mubr.msk.f32.mxu0 %vm1245_vm0, %v1891_v1  ;;  %v1122_v22 = vld [vmem:[%s1885_s4] ss:$0 sm:$0xff]  ;;  %v326_v39 = vsub.s32 4, %v1394_v28  ;;  %v345_v41 = vsub.s32 5, %v1394_v28  ;;  %v364_v43 = vsub.s32 6, %v1394_v28  ;;  %v383_v45 = vsub.s32 7, %v1394_v28 }
   0xd   :  { %1176 = vmatpush3.msra.mxu1 %v162_v11  ;;  %1216 = vset.pattern.permute.xlu1 %v1246_v26  ;;  %v66_v47 = vld [vmem:[%s1883_s2] sm:$0xff]  ;;  %v1432_v11 = vld [vmem:[%s1882_s1 + $0x48] sm:$0xff]  ;;  %vm886_vm12 = vcmask 195712   ;;  %vm893_vm13 = vcmask 261312   ;;  %s1114_s26 = sshll.u32 %s1248_s25, 4  ;;  %s1115_s26 = int_to_ptr.vmem [resolvable:$true] %s1114_s26 }
   0xe   :  { %1177 = vmatprep.subr.mxu1 %v1891_v1  ;;  %1217 = vset.pattern.permute.xlu0 %v1246_v26  ;;  %v1124_v48 = vld [vmem:[%s1887_s6] ss:$0 sm:$0xff]  ;;  %v1485_v26 = vld [vmem:[%s1882_s1 + $0x88] sm:$0xff]  ;;  %s1222_s3 = scalar_lea.vmem %s1115_s26, 128  ;;  %p1227_p1 = scmp.lt.s32.totalorder %s1115_s26, %s1115_s26 }
   0xf   :  { %1178 = vmatpush3.msra.mxu1 %v161_v12  ;;  %v1437_v12 = vld [vmem:[%s1882_s1 + $0x28] sm:$0xff]  ;;  %p1223_p0 = scmp.ne.s32.totalorder %s1115_s26, %s1222_s3  ;;  %p1228_p2 = scmp.lt.s32.totalorder %s1222_s3, %s1222_s3 }
  0x10   :  { %1179 = vmatprep.subr.mxu1 %v1891_v1 }
  0x11   :  { %1180 = vmatpush3.msra.mxu1 %v160_v13  ;;  %v1442_v13 = vld [vmem:[%s1882_s1 + $0x40] sm:$0xff]  ;;  %p1229_p3 = por %p1228_p2, %p1227_p1 }
  0x12   :  { %1181 = vmatprep.subr.mxu1 %v1891_v1 }
  0x13   :  { %1182 = vmatpush3.msra.mxu1 %v159_v14  ;;  %v1447_v14 = vld [vmem:[%s1882_s1 + $0x20] sm:$0xff]  ;;  %p1230_p4 = pnand %p1229_p3, %p1223_p0 }
  0x14   :  { %1183 = vmatprep.subr.mxu1 %v1891_v1 }
  0x15   :  { %1184 = vmatpush3.msra.mxu1 %v158_v15 }
  0x16   :  { %1185 = vmatprep.subr.mxu1 %v1891_v1 }
  0x17   :  { %1186 = vmatpush3.msra.mxu1 %v157_v16  ;;  %v1453_v16 = vld [vmem:[%s1882_s1 + $0x8] sm:$0xff] }
  0x18   :  { %1187 = vmatprep.subr.mxu1 %v1891_v1 }
  0x19   :  { %1188 = vmatpush3.msra.mxu1 %v156_v17  ;;  %v1458_v17 = vld [vmem:[%s1882_s1] sm:$0xff] }
  0x1a   :  { %1189 = vmatprep.subr.mxu1 %v1891_v1 }
  0x1b   :  { %1190 = vmatpush3.msra.mxu1 %v155_v18 }
  0x1c   :  { %1191 = vmatprep.subr.mxu1 %v1891_v1 }
  0x1d   :  { %1192 = vmatpush3.msra.mxu1 %v154_v19 }
  0x1e   :  { %1193 = vmatprep.subr.mxu1 %v1891_v1 }
  0x1f   :  { %1194 = vmatpush3.msra.mxu1 %v153_v20 }
  0x20   :  { %1195 = vmatprep.subr.mxu1 %v1891_v1  ;;  %v1642_v1 = vld [vmem:[%s1882_s1 + $0xd8] sm:$0xff] }
  0x21   :  { %1196 = vmatpush3.msra.mxu1 %v152_v21  ;;  %v1468_v21 = vld [vmem:[%s1882_s1 + $0x30] sm:$0xff] }
  0xc9   :  { %v148_v23 = vpop.f32.mrf.mxu0 }
  0xca   :  { %v149_v24 = vadd.f32 %v1122_v22, %v148_v23  ;;  %v1473_v22 = vld [vmem:[%s1882_s1 + $0x50] sm:$0xff] }
  0xcb   :  { %v1164_v25 = vpop.f32.mrf.mxu0 }
  0xcc   :  { %1198 = vmatmul.mubr.f32.vlgmr.msra.gmra.mxu1 %v149_v24  ;;  %v245_v49 = vmul.f32 %v1124_v48, %v149_v24  ;;  %v1480_v25 = vld [vmem:[%s1882_s1 + $0x68] sm:$0xff] }
 0x18c   :  { %v234_v31 = vpop.f32.mrf.mxu1 }
 0x18d   :  { %v289_v32 = vrot.slane %v234_v31, %v288_v29  ;;  %v270_v33 = vrot.slane %v234_v31, %v269_v30  ;;  %v251_v36 = vrot.slane %v234_v31, %v1399_v35  ;;  %v308_v38 = vrot.slane %v234_v31, %v307_v37  ;;  %v1490_v29 = vld [vmem:[%s1882_s1 + $0x80] sm:$0xff] }
 0x18e   :  { %v1199_v34 = vpop.f32.mrf.mxu1  ;;  %v327_v40 = vrot.slane %v234_v31, %v326_v39  ;;  %v346_v42 = vrot.slane %v234_v31, %v345_v41  ;;  %v365_v44 = vrot.slane %v234_v31, %v364_v43  ;;  %v384_v46 = vrot.slane %v234_v31, %v383_v45 }
 0x18f   :  { %291 = vbcast.lane.b32.xlu1 %v289_v32, 256  ;;  %272 = vbcast.lane.b32.xlu0 %v270_v33, 256 }
 0x193   :  { %295 = vbcast.lane.b32.xlu1 %v289_v32, 264  ;;  %276 = vbcast.lane.b32.xlu0 %v270_v33, 264 }
 0x197   :  { %257 = vbcast.lane.b32.xlu1 %v251_v36, 264  ;;  %253 = vbcast.lane.b32.xlu0 %v251_v36, 256 }
 0x19b   :  { %310 = vbcast.lane.b32.xlu1 %v308_v38, 256  ;;  %280 = vbcast.lane.b32.xlu0 %v270_v33, 272 }
 0x19f   :  { %299 = vbcast.lane.b32.xlu1 %v289_v32, 272  ;;  %314 = vbcast.lane.b32.xlu0 %v308_v38, 264 }
 0x1a3   :  { %333 = vbcast.lane.b32.xlu1 %v327_v40, 264  ;;  %329 = vbcast.lane.b32.xlu0 %v327_v40, 256 }
 0x1a7   :  { %284 = vbcast.lane.b32.xlu1 %v270_v33, 280  ;;  %261 = vbcast.lane.b32.xlu0 %v251_v36, 272  ;;  %v1502_v33 = vld [vmem:[%s1882_s1 + $0x10] sm:$0xff] }
 0x1ab   :  { %348 = vbcast.lane.b32.xlu1 %v346_v42, 256  ;;  %318 = vbcast.lane.b32.xlu0 %v308_v38, 272 }
 0x1af   :  { %303 = vbcast.lane.b32.xlu1 %v289_v32, 280  ;;  %352 = vbcast.lane.b32.xlu0 %v346_v42, 264  ;;  %v1497_v32 = vld [vmem:[%s1882_s1 + $0x38] sm:$0xff] }
 0x1b3   :  { %367 = vbcast.lane.b32.xlu1 %v365_v44, 256  ;;  %337 = vbcast.lane.b32.xlu0 %v327_v40, 272 }
 0x1b7   :  { %265 = vbcast.lane.b32.xlu1 %v251_v36, 280  ;;  %371 = vbcast.lane.b32.xlu0 %v365_v44, 264  ;;  %v1508_v36 = vld [vmem:[%s1882_s1 + $0x60] sm:$0xff] }
 0x1bb   :  { %356 = vbcast.lane.b32.xlu1 %v346_v42, 272  ;;  %322 = vbcast.lane.b32.xlu0 %v308_v38, 280 }
 0x1bf   :  { %390 = vbcast.lane.b32.xlu1 %v384_v46, 264  ;;  %386 = vbcast.lane.b32.xlu0 %v384_v46, 256 }
 0x1c3   :  { %341 = vbcast.lane.b32.xlu1 %v327_v40, 280 }
 0x1c7   :  { %375 = vbcast.lane.b32.xlu1 %v365_v44, 272 }
 0x1cb   :  { %360 = vbcast.lane.b32.xlu1 %v346_v42, 280 }
 0x1cf   :  { %394 = vbcast.lane.b32.xlu1 %v384_v46, 272 }
 0x1d3   :  { %379 = vbcast.lane.b32.xlu1 %v365_v44, 280  ;;  %v1521_v44 = vld [vmem:[%s1882_s1 + $0x70] sm:$0xff] }
 0x1d7   :  { %398 = vbcast.lane.b32.xlu1 %v384_v46, 280 }
 0x1db   :  { %564 = vperm.xlu1 %1216, %v66_v47  }
 0x1de   :  { %246 = vadd.xlane.f32.xlu0 %v245_v49  ;;  %v1530_v49 = vld [vmem:[%s1882_s1 + $0x58] sm:$0xff] }
 0x201   :  { %v292_v50 = vpop.permute.xlu1 %291  ;;  %v273_v51 = vpop.permute.xlu0 %272 }
 0x202   :  { %v408_v23 = vmul.f32 %v292_v50, %v1442_v13  ;;  %v404_v24 = vmul.f32 %v273_v51, %v1447_v14 }
 0x204   :  { %v459_v45 = vsel %vm432_vm2, %v408_v23, 0.0  ;;  %v446_v46 = vsel %vm432_vm2, %v404_v24, 0.0 }
 0x205   :  { %v296_v52 = vpop.permute.xlu1 %295  ;;  %v277_v53 = vpop.permute.xlu0 %276 }
 0x206   :  { %v409_v15 = vmul.f32 %v296_v52, %v1432_v11  ;;  %v405_v20 = vmul.f32 %v277_v53, %v1437_v12 }
 0x208   :  { %v460_v34 = vsel %vm432_vm2, %v409_v15, 0.0  ;;  %v447_v40 = vsel %vm432_vm2, %v405_v20, 0.0  ;;  %v1550_v20 = vld [vmem:[%s1882_s1 + $0xa8] sm:$0xff] }
 0x209   :  { %v258_v54 = vpop.permute.xlu1 %257  ;;  %v254_v55 = vpop.permute.xlu0 %253  ;;  %v461_v51 = vadd.f32 %v460_v34, %v459_v45 }
 0x20a   :  { %v401_v30 = vmul.f32 %v258_v54, %v1453_v16  ;;  %v400_v31 = vmul.f32 %v254_v55, %v1458_v17  ;;  %v448_v55 = vadd.f32 %v447_v40, %v446_v46  ;;  %v1570_v40 = vld [vmem:[%s1882_s1 + $0xc8] sm:$0xff] }
 0x20c   :  { %v434_v52 = vsel %vm432_vm2, %v401_v30, 0.0  ;;  %v433_v53 = vsel %vm432_vm2, %v400_v31, 0.0  ;;  %v1562_v31 = vld [vmem:[%s1882_s1 + $0x18] sm:$0xff] }
 0x20d   :  { %v311_v56 = vpop.permute.xlu1 %310  ;;  %v281_v57 = vpop.permute.xlu0 %280  ;;  %v435_v23 = vadd.f32 %v434_v52, %v433_v53 }
 0x20e   :  { %v406_v37 = vmul.f32 %v281_v57, %v1468_v21  ;;  %v412_v54 = vmul.f32 %v311_v56, %v1508_v36 }
 0x210   :  { %v449_v57 = vsel %vm432_vm2, %v406_v37, 0.0 }
 0x211   :  { %v300_v58 = vpop.permute.xlu1 %299  ;;  %v315_v59 = vpop.permute.xlu0 %314  ;;  %v450_v34 = vadd.f32 %v449_v57, %v448_v55 }
 0x212   :  { %v410_v38 = vmul.f32 %v300_v58, %v1473_v22  ;;  %v413_v41 = vmul.f32 %v315_v59, %v1480_v25  ;;  %v1540_v59 = vld [vmem:[%s1882_s1 + $0xa0] sm:$0xff] }
 0x213   :  { %1900 = vst [vmem:[#allocation5_spill] sm:$0xff] %v1540_v59 }
 0x214   :  { %v462_v58 = vsel %vm432_vm2, %v410_v38, 0.0 }
 0x215   :  { %v334_v60 = vpop.permute.xlu1 %333  ;;  %v330_v62 = vpop.permute.xlu0 %329  ;;  %v463_v37 = vadd.f32 %v462_v58, %v461_v51  ;;  %v1606_v58 = vld [vmem:[%s1882_s1 + $0x98] sm:$0xff] }
 0x216   :  { %v417_v42 = vmul.f32 %v334_v60, %v1485_v26  ;;  %v416_v43 = vmul.f32 %v330_v62, %v1490_v29  ;;  %v473_v62 = vsel %vm432_vm2, %v413_v41, 0.0  ;;  %v1575_v41 = vld [vmem:[%s1882_s1 + $0xb0] sm:$0xff] }
 0x218   :  { %v485_v15 = vsel %vm432_vm2, %v416_v43, 0.0 }
 0x219   :  { %v285_v61 = vpop.permute.xlu1 %284  ;;  %v262_v0 = vpop.permute.xlu0 %261 }
 0x21a   :  { %v407_v47 = vmul.f32 %v285_v61, %v1497_v32  ;;  %v402_v48 = vmul.f32 %v262_v0, %v1502_v33  ;;  %v486_v0 = vsel %vm432_vm2, %v417_v42, 0.0  ;;  %v1580_v42 = vld [vmem:[%s1882_s1 + $0x78] sm:$0xff] }
 0x21b   :  { %1901 = vst [vmem:[#allocation6_spill] sm:$0xff] %v1580_v42  ;;  %v487_v45 = vadd.f32 %v486_v0, %v485_v15 }
 0x21c   :  { %v451_v24 = vsel %vm432_vm2, %v407_v47, 0.0  ;;  %v436_v30 = vsel %vm432_vm2, %v402_v48, 0.0  ;;  %v1588_v47 = vld [vmem:[%s1882_s1 + $0xe8] sm:$0xff]  ;;  %v1593_v48 = vld [vmem:[%s1882_s1 + $0xe0] sm:$0xff] }
 0x21d   :  { %v1413_v63 = vpop.permute.xlu1 %348  ;;  %v319_v4 = vpop.permute.xlu0 %318  ;;  %1902 = vst [vmem:[#allocation7_spill] sm:$0xff] %v1593_v48  ;;  %v452_v53 = vadd.f32 %v451_v24, %v450_v34 }
 0x21e   :  { %v414_v60 = vmul.f32 %v319_v4, %v1521_v44  ;;  %v1557_v4 = vld [vmem:[%s1882_s1 + $0x90] sm:$0xff]  ;;  %v420_v38 = vmul.f32 %v1413_v63, %v1540_v59 }
 0x220   :  { %v475_v46 = vsel %vm432_vm2, %v414_v60, 0.0 }
 0x221   :  { %v304_v2 = vpop.permute.xlu1 %303  ;;  %v1419_v6 = vpop.permute.xlu0 %352 }
 0x222   :  { %v411_v56 = vmul.f32 %v304_v2, %v1530_v49  ;;  %v472_v2 = vsel %vm432_vm2, %v412_v54, 0.0  ;;  %v421_v63 = vmul.f32 %v1419_v6, %v1550_v20  ;;  %v437_v54 = vadd.f32 %v436_v30, %v435_v23  ;;  %v1599_v6 = vld [vmem:[%s1882_s1 + $0xc0] sm:$0xff] }
 0x223   :  { %v474_v43 = vadd.f32 %v473_v62, %v472_v2  ;;  %1903 = vst [vmem:[#allocation8_spill] sm:$0xff] %v1599_v6 }
 0x224   :  { %v464_v55 = vsel %vm432_vm2, %v411_v56, 0.0  ;;  %v1623_v56 = vld [vmem:[%s1882_s1 + $0xb8] sm:$0xff]  ;;  %v499_v30 = vsel %vm432_vm2, %v421_v63, 0.0 }
 0x225   :  { %v1415_v3 = vpop.permute.xlu1 %367  ;;  %v1425_v9 = vpop.permute.xlu0 %337  ;;  %1904 = vst [vmem:[#allocation9_spill] sm:$0xff] %v1623_v56  ;;  %v465_v24 = vadd.f32 %v464_v55, %v463_v37 }
 0x226   :  { %v418_v57 = vmul.f32 %v1425_v9, %v1557_v4  ;;  %v1618_v9 = vld [vmem:[%s1882_s1 + $0xd0] sm:$0xff]  ;;  %v424_v2 = vmul.f32 %v1415_v3, %v1599_v6 }
 0x228   :  { %v488_v37 = vsel %vm432_vm2, %v418_v57, 0.0 }
 0x229   :  { %v1417_v5 = vpop.permute.xlu1 %265  ;;  %v1460_v18 = vpop.permute.xlu0 %371 }
 0x22a   :  { %v403_v60 = vmul.f32 %v1417_v5, %v1562_v31  ;;  %v425_v62 = vmul.f32 %v1460_v18, %v1570_v40  ;;  %v1628_v5 = vld [vmem:[%s1882_s1 + $0xf0] sm:$0xff]  ;;  %v498_v18 = vsel %vm432_vm2, %v420_v38, 0.0 }
 0x22b   :  { %v500_v6 = vadd.f32 %v499_v30, %v498_v18 }
 0x22c   :  { %v512_v63 = vsel %vm432_vm2, %v425_v62, 0.0 }
 0x22d   :  { %v1421_v7 = vpop.permute.xlu1 %356  ;;  %v323_v50 = vpop.permute.xlu0 %322 }
 0x22e   :  { %v422_v0 = vmul.f32 %v1421_v7, %v1575_v41  ;;  %v415_v15 = vmul.f32 %v323_v50, %v1580_v42  ;;  %v476_v7 = vadd.f32 %v475_v46, %v474_v43  ;;  %v438_v46 = vsel %vm432_vm2, %v403_v60, 0.0 }
 0x230   :  { %v477_v55 = vsel %vm432_vm2, %v415_v15, 0.0 }
 0x231   :  { %v1423_v8 = vpop.permute.xlu1 %390  ;;  %v387_v51 = vpop.permute.xlu0 %386 }
 0x232   :  { %v429_v50 = vmul.f32 %v1423_v8, %v1588_v47  ;;  %v428_v23 = vmul.f32 %v387_v51, %v1593_v48  ;;  %v1647_v8 = vld [vmem:[%s1882_s1 + $0xf8] sm:$0xff]  ;;  %v501_v51 = vsel %vm432_vm2, %v422_v0, 0.0 }
 0x233   :  { %1905 = vst [vmem:[#allocation10_spill] sm:$0xff] %v1647_v8  ;;  %v502_v59 = vadd.f32 %v501_v51, %v500_v6 }
 0x234   :  { %v525_v27 = vsel %vm432_vm2, %v429_v50, 0.0  ;;  %v524_v57 = vsel %vm432_vm2, %v428_v23, 0.0  ;;  %v478_v23 = vadd.f32 %v477_v55, %v476_v7 }
 0x235   :  { %v1427_v10 = vpop.permute.xlu1 %341  ;;  %v526_v42 = vadd.f32 %v525_v27, %v524_v57 }
 0x236   :  { %v419_v34 = vmul.f32 %v1427_v10, %v1606_v58 }
 0x238   :  { %v490_v60 = vsel %vm432_vm2, %v419_v34, 0.0  ;;  %v453_v34 = vrot.slane %v452_v53, 4 }
 0x239   :  { %v1462_v19 = vpop.permute.xlu1 %375 }
 0x23a   :  { %v426_v43 = vmul.f32 %v1462_v19, %v1618_v9 }
 0x23c   :  { %v514_v62 = vsel %vm432_vm2, %v426_v43, 0.0  ;;  %v479_v43 = vrot.slane %v478_v23, 4 }
 0x23d   :  { %v1512_v39 = vpop.permute.xlu1 %360 }
 0x23e   :  { %v423_v3 = vmul.f32 %v1512_v39, %v1623_v56  ;;  %v511_v39 = vsel %vm432_vm2, %v424_v2, 0.0  ;;  %v439_v56 = vadd.f32 %v438_v46, %v437_v54  ;;  %v466_v54 = vrot.slane %v465_v24, 4 }
 0x23f   :  { %v513_v50 = vadd.f32 %v512_v63, %v511_v39  ;;  %v454_v63 = vadd.f32 %v453_v34, %v452_v53  ;;  %v480_v27 = vadd.f32 %v479_v43, %v478_v23 }
 0x240   :  { %v503_v0 = vsel %vm432_vm2, %v423_v3, 0.0  ;;  %v467_v6 = vadd.f32 %v466_v54, %v465_v24 }
 0x241   :  { %v395_v61 = vpop.permute.xlu1 %394  ;;  %v515_v30 = vadd.f32 %v514_v62, %v513_v50 }
 0x242   :  { %v430_v10 = vmul.f32 %v395_v61, %v1628_v5  ;;  %v489_v61 = vadd.f32 %v488_v37, %v487_v45  ;;  %v504_v45 = vadd.f32 %v503_v0, %v502_v59  ;;  %v440_v37 = vrot.slane %v439_v56, 4 }
 0x243   :  { %v468_v39 = vrot.slane %v467_v6, 2 }
 0x244   :  { %v527_v15 = vsel %vm432_vm2, %v430_v10, 0.0  ;;  %v505_v10 = vrot.slane %v504_v45, 4  ;;  %v441_v7 = vadd.f32 %v440_v37, %v439_v56 }
 0x245   :  { %v380_v52 = vpop.permute.xlu1 %379  ;;  %v528_v2 = vadd.f32 %v527_v15, %v526_v42  ;;  %v481_v42 = vrot.slane %v480_v27, 2  ;;  %v469_v50 = vadd.f32 %v468_v39, %v467_v6 }
 0x246   :  { %v427_v48 = vmul.f32 %v380_v52, %v1642_v1  ;;  %v491_v52 = vadd.f32 %v490_v60, %v489_v61  ;;  %v506_v57 = vadd.f32 %v505_v10, %v504_v45  ;;  %v442_v59 = vrot.slane %v441_v7, 2 }
 0x248   :  { %v507_v0 = vrot.slane %v506_v57, 2 }
 0x249   :  { %v399_v38 = vpop.permute.xlu1 %398 }
 0x24a   :  { %v431_v19 = vmul.f32 %v399_v38, %v1647_v8  ;;  %v516_v38 = vsel %vm432_vm2, %v427_v48, 0.0  ;;  %v492_v8 = vrot.slane %v491_v52, 4  ;;  %v508_v23 = vadd.f32 %v507_v0, %v506_v57 }
 0x24b   :  { %v517_v46 = vadd.f32 %v516_v38, %v515_v30  ;;  %v443_v38 = vadd.f32 %v442_v59, %v441_v7 }
 0x24c   :  { %v529_v18 = vsel %vm432_vm2, %v431_v19, 0.0  ;;  %v493_v48 = vadd.f32 %v492_v8, %v491_v52  ;;  %v455_v19 = vrot.slane %v454_v63, 2  ;;  %v509_v37 = vrot.slane %v508_v23, 1 }
 0x24d   :  { %v530_v3 = vadd.f32 %v529_v18, %v528_v2  ;;  %v518_v51 = vrot.slane %v517_v46, 4  ;;  %v482_v18 = vadd.f32 %v481_v42, %v480_v27  ;;  %v470_v2 = vrot.slane %v469_v50, 1 }
 0x24e   :  { %v494_v62 = vrot.slane %v493_v48, 2  ;;  %v456_v15 = vadd.f32 %v455_v19, %v454_v63  ;;  %v444_v8 = vrot.slane %v443_v38, 1  ;;  %v510_v57 = vadd.f32 %v509_v37, %v508_v23 }
 0x24f   :  { %v531_v55 = vrot.slane %v530_v3, 4  ;;  %v519_v61 = vadd.f32 %v518_v51, %v517_v46  ;;  %v483_v52 = vrot.slane %v482_v18, 1  ;;  %v471_v46 = vadd.f32 %v470_v2, %v469_v50 }
 0x250   :  { %v495_v56 = vadd.f32 %v494_v62, %v493_v48  ;;  %v457_v30 = vrot.slane %v456_v15, 1 }
 0x251   :  { %v532_v60 = vadd.f32 %v531_v55, %v530_v3  ;;  %v520_v53 = vrot.slane %v519_v61, 2  ;;  %v445_v3 = vadd.f32 %v444_v8, %v443_v38  ;;  %v484_v10 = vadd.f32 %v483_v52, %v482_v18 }
 0x252   :  { %v496_v54 = vrot.slane %v495_v56, 1  ;;  %v458_v43 = vadd.f32 %v457_v30, %v456_v15 }
 0x253   :  { %v533_v24 = vrot.slane %v532_v60, 2  ;;  %v521_v45 = vadd.f32 %v520_v53, %v519_v61 }
 0x254   :  { %v497_v27 = vadd.f32 %v496_v54, %v495_v56  ;;  %v1906_v56 = vlaneseq }
 0x255   :  { %v534_v34 = vadd.f32 %v533_v24, %v532_v60  ;;  %v522_v63 = vrot.slane %v521_v45, 1 }
 0x256   :  { %v1671_v30 = vand.u32 127, %v1906_v56  ;;  %v565_v54 = vpop.permute.xlu1 %564 }
 0x257   :  { %v535_v6 = vrot.slane %v534_v34, 1  ;;  %v523_v0 = vadd.f32 %v522_v63, %v521_v45 }
 0x258   :  { %vm566_vm10 = vcmp.gt.s32.totalorder %v1671_v30, %v565_v54 }
 0x259   :  { %v536_v15 = vadd.f32 %v535_v6, %v534_v34 }
 0x267   :  { %v247_v7 = vpop.xlane.xlu0 %246 }
 0x268   :  { %v538_v51 = vrot.slane %v247_v7, 1  ;;  %v539_v55 = vrot.slane %v247_v7, 2  ;;  %v540_v48 = vrot.slane %v247_v7, 3  ;;  %v541_v19 = vrot.slane %v247_v7, 4 }
 0x269   :  { %v542_v39 = vrot.slane %v247_v7, 5  ;;  %v543_v59 = vrot.slane %v247_v7, 6  ;;  %v544_v42 = vrot.slane %v247_v7, 7  ;;  %v553_v38 = vadd.f32 %v445_v3, %v247_v7 }
 0x26a   :  { %v554_v61 = vadd.f32 %v538_v51, %v458_v43  ;;  %v555_v60 = vadd.f32 %v539_v55, %v471_v46  ;;  %v556_v62 = vadd.f32 %v540_v48, %v484_v10  ;;  %v557_v50 = vadd.f32 %v541_v19, %v497_v27 }
 0x26b   :  { %v558_v18 = vadd.f32 %v542_v39, %v510_v57  ;;  %v559_v2 = vadd.f32 %v543_v59, %v523_v0  ;;  %v560_v23 = vadd.f32 %v544_v42, %v536_v15  ;;  %v1247_v42 = vmov 1966171168  }
 0x26c   :  { %v575_v53 = vrot.slane %v554_v61, 7  ;;  %v578_v24 = vrot.slane %v555_v60, 6  ;;  %v581_v52 = vrot.slane %v556_v62, 5  ;;  %v584_v34 = vrot.slane %v557_v50, 4 }
 0x26d   :  { %v587_v43 = vrot.slane %v558_v18, 3  ;;  %v590_v3 = vrot.slane %v559_v2, 2  ;;  %v593_v63 = vrot.slane %v560_v23, 1  ;;  %v612_v61 = vunpack.c.l.s4 %v1247_v42 }
 0x26e   :  { %v577_v8 = vsel %vm576_vm3, %v575_v53, %v553_v38 }
 0x26f   :  { %v580_v45 = vsel %vm579_vm4, %v578_v24, %v577_v8  ;;  %v613_v60 = vunpack.c.0.s8 %v612_v61 }
 0x270   :  { %v583_v37 = vsel %vm582_vm5, %v581_v52, %v580_v45 }
 0x271   :  { %v586_v46 = vsel %vm585_vm6, %v584_v34, %v583_v37  ;;  %v616_v62 = vsub.s32 %v613_v60, %v1394_v28 }
 0x272   :  { %v589_v10 = vsel %vm588_vm7, %v587_v43, %v586_v46 }
 0x273   :  { %v592_v6 = vsel %vm591_vm8, %v590_v3, %v589_v10 }
 0x274   :  { %v595_v7 = vsel %vm594_vm9, %v593_v63, %v592_v6 }
 0x275   :  { %v597_v27 = vsel %vm566_vm10, -1e+10, %v595_v7 }
 0x276   :  { %v598_v51 = vsel %vm432_vm2, %v597_v27, -inf }
 0x277   :  { %599 = vmax.xlane.f32.xlu1 %v598_v51 }
 0x300   :  { %v600_v55 = vpop.xlane.xlu1 %599 }
 0x301   :  { %v601_v48 = vsub.f32 %v597_v27, %v600_v55 }
 0x303   :  { %v602_v57 = vmul.f32 1.442695, %v601_v48 }
 0x305   :  { %1218 = vpow2.f32 %v602_v57 }
 0x312   :  { %v1219_v19 = vpop.eup %1218 }
 0x313   :  { %v604_v39 = vsel %vm432_vm2, %v1219_v19, 0.0 }
 0x314   :  { %605 = vadd.xlane.f32.xlu0 %v604_v39 }
 0x39d   :  { %v606_v59 = vpop.xlane.xlu0 %605 }
 0x39e   :  { %1220 = vrcp.f32 %v606_v59 }
 0x3ab   :  { %v1221_v0 = vpop.eup %1220 }
 0x3ac   :  { %v608_v15 = vmul.f32 %v1221_v0, %v1219_v19 }
 0x3ae   :  { %v617_v50 = vrot.slane %v608_v15, %v616_v62  ;;  %v610_v38 = vcombine.high %v608_v15, %v608_v15 }
 0x3b0   :  { %v633_v18 = vrot.slane %v617_v50, %v616_v62  ;;  %v624_v53 = vrot.slane %v610_v38, %v616_v62  ;;  %v625_v24 = vcombine.high %v617_v50, %v617_v50 }
 0x3b2   :  { %v662_v56 = vrot.slane %v633_v18, %v1399_v35  ;;  %v655_v2 = vcombine.high %v633_v18, %v633_v18  ;;  %v640_v23 = vrot.slane %v624_v53, %v616_v62  ;;  %v647_v34 = vrot.slane %v625_v24, %v616_v62 }
 0x3b3   :  { %v626_v7 = vcombine.high %v624_v53, %v624_v53 }
 0x3b4   :  { %v702_v8 = vmul.f32 %v662_v56, %v1562_v31  ;;  %v699_v52 = vmul.f32 %v662_v56, %v1458_v17  ;;  %v670_v54 = vrot.slane %v655_v2, %v1399_v35  ;;  %v700_v45 = vmul.f32 %v662_v56, %v1453_v16 }
 0x3b5   :  { %v1693_v3 = vrot.slane %v640_v23, %v1399_v35  ;;  %v701_v31 = vmul.f32 %v662_v56, %v1502_v33  ;;  %v666_v17 = vrot.slane %v647_v34, %v1399_v35  ;;  %v657_v6 = vcombine.high %v647_v34, %v647_v34 }
 0x3b6   :  { %v740_v37 = vsel %vm432_vm2, %v702_v8, 0.0  ;;  %v731_v43 = vsel %vm432_vm2, %v699_v52, 0.0  ;;  %v709_v46 = vmul.f32 %v670_v54, %v1473_v22  ;;  %v734_v10 = vsel %vm432_vm2, %v700_v45, 0.0 }
 0x3b7   :  { %741 = vadd.xlane.f32.xlu1 %v740_v37  ;;  %732 = vadd.xlane.f32.xlu0 %v731_v43  ;;  %v716_v63 = vmul.f32 %v1693_v3, %v1485_v26  ;;  %v737_v22 = vsel %vm432_vm2, %v701_v31, 0.0  ;;  %v703_v51 = vmul.f32 %v666_v17, %v1447_v14  ;;  %v717_v33 = vmul.f32 %v1693_v3, %v1557_v4  ;;  %v1907_v37 = vld [vmem:[#allocation6_spill] sm:$0xff]  ;;  %v1909_v31 = vld [vmem:[#allocation8_spill] sm:$0xff] }
 0x3b8   :  { %v761_v16 = vsel %vm432_vm2, %v709_v46, 0.0  ;;  %v1707_v55 = vrot.slane %v657_v6, %v1399_v35  ;;  %v704_v26 = vmul.f32 %v666_v17, %v1437_v12  ;;  %v654_v39 = vrot.slane %v626_v7, %v616_v62  ;;  %v1911_v7 = vld [vmem:[#allocation7_spill] sm:$0xff] }
 0x3b9   :  { %v782_v27 = vsel %vm432_vm2, %v716_v63, 0.0  ;;  %v743_v48 = vsel %vm432_vm2, %v703_v51, 0.0  ;;  %v785_v57 = vsel %vm432_vm2, %v717_v33, 0.0  ;;  %v705_v14 = vmul.f32 %v666_v17, %v1468_v21  ;;  %v1912_v33 = vld [vmem:[#allocation10_spill] sm:$0xff] }
 0x3ba   :  { %v712_v19 = vmul.f32 %v1707_v55, %v1480_v25  ;;  %v746_v4 = vsel %vm432_vm2, %v704_v26, 0.0  ;;  %v713_v42 = vmul.f32 %v1707_v55, %v1521_v44  ;;  %v682_v12 = vrot.slane %v654_v39, %v1399_v35 }
 0x3bb   :  { %735 = vadd.xlane.f32.xlu0 %v734_v10  ;;  %762 = vadd.xlane.f32.xlu1 %v761_v16  ;;  %v707_v61 = vmul.f32 %v670_v54, %v1442_v13  ;;  %v749_v25 = vsel %vm432_vm2, %v705_v14, 0.0  ;;  %v656_v21 = vcombine.high %v640_v23, %v640_v23  ;;  %v708_v44 = vmul.f32 %v670_v54, %v1432_v11  ;;  %v1910_v10 = vld [vmem:[#allocation9_spill] sm:$0xff] }
 0x3bc   :  { %v770_v59 = vsel %vm432_vm2, %v712_v19, 0.0  ;;  %v773_v60 = vsel %vm432_vm2, %v713_v42, 0.0  ;;  %v720_v62 = vmul.f32 %v682_v12, %v1550_v20  ;;  %v721_v50 = vmul.f32 %v682_v12, %v1575_v41  ;;  %v828_v19 = vld [vmem:[%s1888_s7 + $0x8] sm:$0xff] }
 0x3bd   :  { %v755_v0 = vsel %vm432_vm2, %v707_v61, 0.0  ;;  %v686_v38 = vrot.slane %v656_v21, %v1399_v35  ;;  %v706_v13 = vmul.f32 %v666_v17, %v1497_v32  ;;  %v758_v18 = vsel %vm432_vm2, %v708_v44, 0.0 }
 0x3be   :  { %v794_v15 = vsel %vm432_vm2, %v720_v62, 0.0  ;;  %v797_v20 = vsel %vm432_vm2, %v721_v50, 0.0  ;;  %v658_v24 = vcombine.high %v654_v39, %v654_v39  ;;  %v710_v56 = vmul.f32 %v670_v54, %v1530_v49  ;;  %v827_v39 = vld [vmem:[%s1888_s7] sm:$0xff] }
 0x3bf   :  { %738 = vadd.xlane.f32.xlu0 %v737_v22  ;;  %783 = vadd.xlane.f32.xlu1 %v782_v27  ;;  %v724_v53 = vmul.f32 %v686_v38, %v1570_v40  ;;  %v752_v11 = vsel %vm432_vm2, %v706_v13, 0.0  ;;  %v725_v2 = vmul.f32 %v686_v38, %v1618_v9  ;;  %v715_v40 = vmul.f32 %v1693_v3, %v1490_v29 }
 0x3c0   :  { %v690_v23 = vrot.slane %v658_v24, %v1399_v35  ;;  %v764_v32 = vsel %vm432_vm2, %v710_v56, 0.0  ;;  %v718_v35 = vmul.f32 %v1693_v3, %v1606_v58  ;;  %v711_v29 = vmul.f32 %v1707_v55, %v1508_v36 }
 0x3c1   :  { %v806_v41 = vsel %vm432_vm2, %v724_v53, 0.0  ;;  %v809_v8 = vsel %vm432_vm2, %v725_v2, 0.0  ;;  %v779_v49 = vsel %vm432_vm2, %v715_v40, 0.0  ;;  %v714_v43 = vmul.f32 %v1707_v55, %v1907_v37 }
 0x3c2   :  { %v728_v52 = vmul.f32 %v690_v23, %v1588_v47  ;;  %v729_v9 = vmul.f32 %v690_v23, %v1628_v5  ;;  %v788_v45 = vsel %vm432_vm2, %v718_v35, 0.0  ;;  %v767_v47 = vsel %vm432_vm2, %v711_v29, 0.0  ;;  %v1908_v5 = vld [vmem:[#allocation5_spill] sm:$0xff] }
 0x3c3   :  { %744 = vadd.xlane.f32.xlu0 %v743_v48  ;;  %786 = vadd.xlane.f32.xlu1 %v785_v57  ;;  %v776_v58 = vsel %vm432_vm2, %v714_v43, 0.0  ;;  %v719_v46 = vmul.f32 %v682_v12, %v1908_v5  ;;  %v723_v17 = vmul.f32 %v686_v38, %v1909_v31  ;;  %v722_v16 = vmul.f32 %v682_v12, %v1910_v10  ;;  %v830_v48 = vld [vmem:[%s1888_s7 + $0x18] sm:$0xff] }
 0x3c4   :  { %v818_v54 = vsel %vm432_vm2, %v728_v52, 0.0  ;;  %v821_v34 = vsel %vm432_vm2, %v729_v9, 0.0  ;;  %v726_v6 = vmul.f32 %v686_v38, %v1642_v1  ;;  %v727_v27 = vmul.f32 %v690_v23, %v1911_v7  ;;  %v829_v1 = vld [vmem:[%s1888_s7 + $0x10] sm:$0xff]  ;;  %1201 = vmatpush3.msra.mxu0 %v830_v48 }
 0x3c5   :  { %v791_v3 = vsel %vm432_vm2, %v719_v46, 0.0  ;;  %v803_v36 = vsel %vm432_vm2, %v723_v17, 0.0  ;;  %v800_v63 = vsel %vm432_vm2, %v722_v16, 0.0  ;;  %v730_v55 = vmul.f32 %v690_v23, %v1912_v33 }
 0x3c6   :  { %v812_v22 = vsel %vm432_vm2, %v726_v6, 0.0  ;;  %v815_v51 = vsel %vm432_vm2, %v727_v27, 0.0  ;;  %v1913_v57 = vmov 0.0   ;;  %v874_v14 = vadd.s32 4294967288, %v1671_v30 }
 0x3c7   :  { %747 = vadd.xlane.f32.xlu0 %v746_v4  ;;  %771 = vadd.xlane.f32.xlu1 %v770_v59  ;;  %v824_v26 = vsel %vm432_vm2, %v730_v55, 0.0  ;;  %v1786_v59 = vsub.s32 %v1671_v30, %v1394_v28  ;;  %v888_v35 = vadd.s32 4294967272, %v1671_v30 }
 0x3c8   :  { %1202 = vmatprep.subr.mxu0 %v1913_v57  ;;  %v1789_v42 = vsub.s32 %v874_v14, %v1394_v28 }
 0x3c9   :  { %1203 = vmatpush3.msra.mxu0 %v829_v1 }
 0x3ca   :  { %1204 = vmatprep.subr.mxu0 %v1913_v57 }
 0x3cb   :  { %750 = vadd.xlane.f32.xlu0 %v749_v25  ;;  %774 = vadd.xlane.f32.xlu1 %v773_v60 }
 0x3cc   :  { %1205 = vmatpush3.msra.mxu0 %v828_v19 }
 0x3cd   :  { %1206 = vmatprep.subr.mxu0 %v1913_v57 }
 0x3ce   :  { %1207 = vmatpush3.msra.mxu0 %v827_v39 }
 0x3cf   :  { %756 = vadd.xlane.f32.xlu0 %v755_v0  ;;  %795 = vadd.xlane.f32.xlu1 %v794_v15 }
 0x3d3   :  { %759 = vadd.xlane.f32.xlu0 %v758_v18  ;;  %798 = vadd.xlane.f32.xlu1 %v797_v20 }
 0x3d7   :  { %753 = vadd.xlane.f32.xlu0 %v752_v11  ;;  %807 = vadd.xlane.f32.xlu1 %v806_v41 }
 0x3db   :  { %765 = vadd.xlane.f32.xlu0 %v764_v32  ;;  %810 = vadd.xlane.f32.xlu1 %v809_v8 }
 0x3df   :  { %780 = vadd.xlane.f32.xlu0 %v779_v49  ;;  %819 = vadd.xlane.f32.xlu1 %v818_v54  ;;  %v881_v49 = vadd.s32 4294967280, %v1671_v30 }
 0x3e1   :  { %v1805_v9 = vsub.s32 %v881_v49, %v1394_v28 }
 0x3e3   :  { %789 = vadd.xlane.f32.xlu0 %v788_v45  ;;  %822 = vadd.xlane.f32.xlu1 %v821_v34  ;;  %v1808_v34 = vsub.s32 %v888_v35, %v1394_v28 }
 0x3e7   :  { %768 = vadd.xlane.f32.xlu0 %v767_v47 }
 0x3eb   :  { %777 = vadd.xlane.f32.xlu0 %v776_v58 }
 0x3ef   :  { %792 = vadd.xlane.f32.xlu0 %v791_v3 }
 0x3f3   :  { %804 = vadd.xlane.f32.xlu0 %v803_v36 }
 0x3f7   :  { %801 = vadd.xlane.f32.xlu0 %v800_v63 }
 0x3fb   :  { %813 = vadd.xlane.f32.xlu0 %v812_v22 }
 0x3ff   :  { %816 = vadd.xlane.f32.xlu0 %v815_v51 }
 0x403   :  { %825 = vadd.xlane.f32.xlu0 %v824_v26 }
 0x440   :  { %v733_v4 = vpop.xlane.xlu0 %732  ;;  %v742_v60 = vpop.xlane.xlu1 %741 }
 0x441   :  { %v873_v61 = vrot.slane %v733_v4, %v1786_v59  ;;  %v892_v31 = vrot.slane %v742_v60, %v1808_v34 }
 0x444   :  { %v736_v12 = vpop.xlane.xlu0 %735  ;;  %v763_v15 = vpop.xlane.xlu1 %762 }
 0x445   :  { %v878_v25 = vrot.slane %v736_v12, %v1789_v42  ;;  %v926_v17 = vrot.slane %v763_v15, %v1805_v9 }
 0x447   :  { %v880_v62 = vsel %vm879_vm11, %v878_v25, %v873_v61 }
 0x448   :  { %v739_v21 = vpop.xlane.xlu0 %738  ;;  %v1794_v50 = vpop.xlane.xlu1 %783 }
 0x449   :  { %v885_v47 = vrot.slane %v739_v21, %v1805_v9  ;;  %v959_v36 = vrot.slane %v1794_v50, %v1789_v42 }
 0x44b   :  { %v887_v16 = vsel %vm886_vm12, %v885_v47, %v880_v62 }
 0x44c   :  { %v745_v0 = vpop.xlane.xlu0 %744  ;;  %v1796_v18 = vpop.xlane.xlu1 %786  ;;  %v894_v39 = vsel %vm893_vm13, %v892_v31, %v887_v16 }
 0x44d   :  { %v898_v30 = vrot.slane %v745_v0, %v1786_v59  ;;  %v964_v14 = vrot.slane %v1796_v18, %v1805_v9 }
 0x450   :  { %v748_v44 = vpop.xlane.xlu0 %747  ;;  %v772_v53 = vpop.xlane.xlu1 %771 }
 0x451   :  { %v902_v37 = vrot.slane %v748_v44, %v1789_v42  ;;  %v940_v10 = vrot.slane %v772_v53, %v1789_v42 }
 0x453   :  { %v903_v63 = vsel %vm879_vm11, %v902_v37, %v898_v30 }
 0x454   :  { %v751_v38 = vpop.xlane.xlu0 %750  ;;  %v775_v11 = vpop.xlane.xlu1 %774 }
 0x455   :  { %v907_v58 = vrot.slane %v751_v38, %v1805_v9  ;;  %v945_v26 = vrot.slane %v775_v11, %v1805_v9 }
 0x457   :  { %v908_v7 = vsel %vm886_vm12, %v907_v58, %v903_v63 }
 0x458   :  { %v757_v13 = vpop.xlane.xlu0 %756  ;;  %v796_v2 = vpop.xlane.xlu1 %795 }
 0x459   :  { %v917_v46 = vrot.slane %v757_v13, %v1786_v59  ;;  %v978_v4 = vrot.slane %v796_v2, %v1789_v42 }
 0x45c   :  { %v760_v20 = vpop.xlane.xlu0 %759  ;;  %v1800_v8 = vpop.xlane.xlu1 %798 }
 0x45d   :  { %v921_v43 = vrot.slane %v760_v20, %v1789_v42  ;;  %v983_v61 = vrot.slane %v1800_v8, %v1805_v9 }
 0x45f   :  { %v922_v6 = vsel %vm879_vm11, %v921_v43, %v917_v46 }
 0x460   :  { %v754_v24 = vpop.xlane.xlu0 %753  ;;  %v808_v52 = vpop.xlane.xlu1 %807  ;;  %v927_v12 = vsel %vm886_vm12, %v926_v17, %v922_v6 }
 0x461   :  { %v912_v28 = vrot.slane %v754_v24, %v1808_v34  ;;  %v997_v25 = vrot.slane %v808_v52, %v1789_v42 }
 0x463   :  { %v913_v48 = vsel %vm893_vm13, %v912_v28, %v908_v7 }
 0x464   :  { %v766_v56 = vpop.xlane.xlu0 %765  ;;  %v811_v29 = vpop.xlane.xlu1 %810  ;;  %v1028_v21 = vsel %vm576_vm3, %v913_v48, %v894_v39 }
 0x465   :  { %v931_v22 = vrot.slane %v766_v56, %v1808_v34  ;;  %v1002_v24 = vrot.slane %v811_v29, %v1805_v9 }
 0x467   :  { %v932_v60 = vsel %vm893_vm13, %v931_v22, %v927_v12 }
 0x468   :  { %v781_v41 = vpop.xlane.xlu0 %780  ;;  %v820_v27 = vpop.xlane.xlu1 %819  ;;  %v1029_v53 = vsel %vm579_vm4, %v932_v60, %v1028_v21 }
 0x469   :  { %v955_v1 = vrot.slane %v781_v41, %v1786_v59  ;;  %v1016_v56 = vrot.slane %v820_v27, %v1789_v42 }
 0x46b   :  { %v960_v50 = vsel %vm879_vm11, %v959_v36, %v955_v1 }
 0x46c   :  { %v1798_v23 = vpop.xlane.xlu0 %789  ;;  %v823_v11 = vpop.xlane.xlu1 %822 }
 0x46d   :  { %v969_v38 = vrot.slane %v1798_v23, %v1808_v34  ;;  %v965_v23 = vsel %vm886_vm12, %v964_v14, %v960_v50 }
 0x46f   :  { %v970_v49 = vsel %vm893_vm13, %v969_v38, %v965_v23 }
 0x470   :  { %v769_v32 = vpop.xlane.xlu0 %768 }
 0x471   :  { %v936_v5 = vrot.slane %v769_v32, %v1786_v59 }
 0x473   :  { %v941_v51 = vsel %vm879_vm11, %v940_v10, %v936_v5 }
 0x474   :  { %v778_v40 = vpop.xlane.xlu0 %777  ;;  %v946_v62 = vsel %vm886_vm12, %v945_v26, %v941_v51 }
 0x475   :  { %v950_v33 = vrot.slane %v778_v40, %v1808_v34 }
 0x477   :  { %v951_v0 = vsel %vm893_vm13, %v950_v33, %v946_v62 }
 0x478   :  { %v793_v54 = vpop.xlane.xlu0 %792  ;;  %v1030_v2 = vsel %vm582_vm5, %v951_v0, %v1029_v53 }
 0x479   :  { %v974_v55 = vrot.slane %v793_v54, %v1786_v59  ;;  %v1021_v54 = vrot.slane %v823_v11, %v1805_v9  ;;  %v1125_v9 = vld [vmem:[%s1889_s8] ss:$0 sm:$0xff] }
 0x47b   :  { %v979_v15 = vsel %vm879_vm11, %v978_v4, %v974_v55 }
 0x47c   :  { %v805_v45 = vpop.xlane.xlu0 %804  ;;  %v984_v32 = vsel %vm886_vm12, %v983_v61, %v979_v15 }
 0x47d   :  { %v993_v57 = vrot.slane %v805_v45, %v1786_v59 }
 0x47f   :  { %v998_v13 = vsel %vm879_vm11, %v997_v25, %v993_v57 }
 0x480   :  { %v802_v3 = vpop.xlane.xlu0 %801  ;;  %v1003_v40 = vsel %vm886_vm12, %v1002_v24, %v998_v13 }
 0x481   :  { %v988_v44 = vrot.slane %v802_v3, %v1808_v34 }
 0x483   :  { %v989_v8 = vsel %vm893_vm13, %v988_v44, %v984_v32 }
 0x484   :  { %v814_v19 = vpop.xlane.xlu0 %813 }
 0x485   :  { %v1007_v18 = vrot.slane %v814_v19, %v1808_v34 }
 0x487   :  { %v1008_v42 = vsel %vm893_vm13, %v1007_v18, %v1003_v40 }
 0x488   :  { %v817_v20 = vpop.xlane.xlu0 %816 }
 0x489   :  { %v1012_v41 = vrot.slane %v817_v20, %v1786_v59  ;;  %v1031_v59 = vsel %vm585_vm6, %v970_v49, %v1030_v2 }
 0x48a   :  { %v1032_v29 = vsel %vm588_vm7, %v989_v8, %v1031_v59 }
 0x48b   :  { %v1017_v52 = vsel %vm879_vm11, %v1016_v56, %v1012_v41  ;;  %v1033_v37 = vsel %vm591_vm8, %v1008_v42, %v1032_v29 }
 0x48c   :  { %v826_v35 = vpop.xlane.xlu0 %825  ;;  %v1022_v47 = vsel %vm886_vm12, %v1021_v54, %v1017_v52 }
 0x48d   :  { %v1026_v45 = vrot.slane %v826_v35, %v1808_v34 }
 0x48f   :  { %v1027_v43 = vsel %vm893_vm13, %v1026_v45, %v1022_v47 }
 0x490   :  { %v1034_v58 = vsel %vm594_vm9, %v1027_v43, %v1033_v37 }
 0x491   :  { %1209 = vmatmul.mubr.msk.f32.vlgmr.msra.gmra.mxu0 %vm78_vm1, %v1034_v58 }
 0x551   :  { %v1103_v5 = vpop.f32.mrf.mxu0 }
 0x552   :  { %v1104_v34 = vadd.f32 %v1125_v9, %v1103_v5 }
 0x553   :  { %v1210_v30 = vpop.f32.mrf.mxu0 }
 0x554   :  { %1107 = vst [vmem:[#allocation2] sm:$0xff] %v1104_v34 }
 0x555   :  { %1233 = shalt.err (!%p1230_p4)
}
 0x556   :  { %1117 = dma.vmem_to_hbm [thread:$0]  %s1115_s26, 128, %s1890_s9, [#allocation3]  }
 0x557   :  { %1242 = dma.done.wait [#allocation3], 128  }
 0x558   :  { %1243 = vsyncadd [#allocation3], 4294967168 }
 0x559   :  { %1121 = vsyncpa [#allocation3], 1 }

</bundles_post_ra>
